<compile_context>
chip_gen: v7x
topology: tpu7x:2x2x1
jax: 0.10.0
libtpu: 0.0.40
codegen_flags: <defaults>
</compile_context>

<pallas_src>
import functools

import jax
import jax.numpy as jnp
from jax.experimental import pallas as pl
from jax.experimental.pallas import tpu as pltpu

_SUBLANE = 8
_LANE = 128
_TB_CAP = 2048   # max batch-lanes per grid step (well inside scoped VMEM)


def _round_up(x, m):
    return ((x + m - 1) // m) * m


# ----------------------------- Pallas kernel --------------------------------
def _policy1d_kernel(inv_heat_ref, x_ref, w_ref, out_ref, *,
                     sp, dp, outp, action_size, layers):
    """Fused policy+value MLP in batch-on-lanes layout.

    w_ref (packed slab, (L+1)*DP + OUTP rows x DP cols), all chunks transposed
    (out, in) with biases folded as an extra "ones" input:
      rows [0      : DP)       : layer-0 weight, only cols [0:SP) used
      rows [k*DP   : (k+1)*DP) : fused block-diagonal hidden layer k  (k=1..L)
      rows [(L+1)*DP : +OUTP)  : last layer -> [policy | value | policy] rows
    """
    A = action_size
    inv_heat = inv_heat_ref[0]

    x = x_ref[...]                                         # (SP, TB), lanes = batch

    # layer 0 (bias folded via the constant-ones row of x)
    w0 = w_ref[0:dp, 0:sp]                                 # (DP, SP)
    h = jnp.dot(w0, x.astype(w0.dtype), preferred_element_type=jnp.float32)
    h = jnp.maximum(h, 0.0)                                # (DP, TB); ones-carry row stays 1

    # fused block-diagonal hidden layers (bias row folded into each matmul)
    for k in range(1, layers + 1):
        r = k * dp
        wk = w_ref[r:r + dp, :]                            # (DP, DP)
        h = jnp.dot(wk, h.astype(wk.dtype), preferred_element_type=jnp.float32)
        h = jnp.maximum(h, 0.0)

    # last layer: rows [0:A) policy logits, row A value, rows [A+1:2A+1) policy again
    r = (layers + 1) * dp
    wl = w_ref[r:r + outp, :]                              # (OUTP, DP)
    y = jnp.dot(wl, h.astype(wl.dtype), preferred_element_type=jnp.float32)  # (OUTP, TB)

    # temperature-scaled softmax over the policy rows (sublane-axis reduction)
    row = jax.lax.broadcasted_iota(jnp.int32, y.shape, 0)
    is_pol = row < A
    scaled = y * inv_heat
    masked = jnp.where(is_pol, scaled, -jnp.inf)
    m = jnp.max(masked, axis=0, keepdims=True)             # (1, TB)
    e = jnp.exp(masked - m)                                # non-policy rows -> 0
    denom = jnp.sum(e, axis=0, keepdims=True)
    probs = e * pl.reciprocal(denom, approx=True)

    is_logit = jnp.logical_and(row > A, row < 2 * A + 1)
    out = jnp.where(is_pol, probs, jnp.where(is_logit, scaled, y))
    out_ref[...] = out.astype(out_ref.dtype)


# --------------------------- parameter handling ------------------------------
def init_policy1d_params(key, state_size=4, action_size=2, hidden_size=32, layers=2):
    """PyTorch-Linear-style init. Weights stored as (in, out), biases as (1, out)."""
    dims_policy = [state_size] + [hidden_size] * (layers + 1) + [action_size]
    dims_value = [state_size] + [hidden_size] * (layers + 1) + [1]

    def make_stack(key, dims):
        ws, bs = [], []
        for i in range(len(dims) - 1):
            fan_in, fan_out = dims[i], dims[i + 1]
            key, kw, kb = jax.random.split(key, 3)
            bound = 1.0 / jnp.sqrt(fan_in)
            ws.append(jax.random.uniform(kw, (fan_in, fan_out), jnp.float32,
                                         -bound, bound))
            bs.append(jax.random.uniform(kb, (1, fan_out), jnp.float32,
                                         -bound, bound))
        return key, ws, bs

    key, pws, pbs = make_stack(key, dims_policy)
    key, vws, vbs = make_stack(key, dims_value)
    return pws, pbs, vws, vbs


def pack_policy1d_params(params, *, state_size, action_size, hidden_size, layers,
                         param_dtype=jnp.float32):
    """One-time repack of all parameter tensors into a single lane-dense slab.

    All chunks are (out, in)-transposed so the kernel runs batch-on-lanes.
    Biases are folded as an extra input row (the "ones carry").
    param_dtype=jnp.bfloat16 halves slab DMA on v6e/v7x (accumulation stays f32).
    """
    pws, pbs, vws, vbs = params
    H = hidden_size
    D = 2 * H
    A = action_size
    S = state_size
    SP = _round_up(S + 1, _SUBLANE)            # +1 : folded-bias ones row of x
    DP = _round_up(D + 1, _LANE)               # fused hidden width + ones carry
    OUTP = _round_up(2 * A + 1, _SUBLANE)      # [probs | value | logits] rows
    assert 2 * A + 1 <= OUTP and D + 1 <= DP and S + 1 <= SP

    f32 = jnp.float32
    chunks = []

    # layer 0, built in (in_aug, out_aug) layout then transposed -> (DP, SP)
    a0 = jnp.zeros((SP, DP), f32)
    a0 = a0.at[:S, 0:H].set(pws[0])
    a0 = a0.at[:S, H:D].set(vws[0])
    a0 = a0.at[S, 0:H].set(pbs[0][0])
    a0 = a0.at[S, H:D].set(vbs[0][0])
    a0 = a0.at[S, D].set(1.0)                  # ones-carry seed
    c0 = jnp.zeros((DP, DP), f32).at[:, :SP].set(a0.T)
    chunks.append(c0)

    # hidden layers: block-diagonal + bias row + ones-carry, transposed
    for k in range(1, layers + 1):
        ak = jnp.zeros((DP, DP), f32)
        ak = ak.at[0:H, 0:H].set(pws[k])
        ak = ak.at[H:D, H:D].set(vws[k])
        ak = ak.at[D, 0:H].set(pbs[k][0])
        ak = ak.at[D, H:D].set(vbs[k][0])
        ak = ak.at[D, D].set(1.0)              # propagate ones-carry
        chunks.append(ak.T)

    # last layer: policy cols, value col, duplicated policy cols (raw logits out)
    al = jnp.zeros((DP, OUTP), f32)
    al = al.at[0:H, 0:A].set(pws[-1])
    al = al.at[H:D, A:A + 1].set(vws[-1])
    al = al.at[0:H, A + 1:2 * A + 1].set(pws[-1])
    al = al.at[D, 0:A].set(pbs[-1][0])
    al = al.at[D, A:A + 1].set(vbs[-1][0])
    al = al.at[D, A + 1:2 * A + 1].set(pbs[-1][0])
    chunks.append(al.T)                        # (OUTP, DP)

    slab = jnp.concatenate(chunks, axis=0).astype(param_dtype)
    meta = dict(state_size=S, sp=SP, dp=DP, outp=OUTP,
                action_size=A, hidden=H, layers=layers)
    return slab, meta


# ------------------------------ wrapper --------------------------------------
def _policy1d_call(x, packed, *, logheat):
    slab, meta = packed
    S, SP, DP = meta["state_size"], meta["sp"], meta["dp"]
    OUTP, A, L = meta["outp"], meta["action_size"], meta["layers"]
    B = x.shape[0]

    # Batch tiling: lane-dense (batch on the 128-lane axis). Once B > 128 split
    # into >= 2 grid steps so "parallel" semantics shard across v7x TensorCores;
    # cap raised to 2048 lanes so big rollout batches amortize per-step overhead.
    B_ceil = _round_up(max(B, 1), _LANE)
    if B_ceil <= _LANE:
        TB = B_ceil
    else:
        TB = min(_TB_CAP, _round_up(-(-B_ceil // 2), _LANE))
    B_pad = _round_up(B_ceil, TB)

    # x transposed to (SP, B_pad); row S carries the constant 1 that folds biases.
    x_t = jnp.zeros((SP, B_pad), jnp.float32)
    x_t = x_t.at[:S, :B].set(jnp.transpose(x).astype(jnp.float32))
    x_t = x_t.at[S, :].set(1.0)

    inv_heat = jnp.reshape(1.0 / jnp.asarray(logheat, jnp.float32), (1,))

    cost = pl.CostEstimate(
        flops=2 * B_pad * (DP * SP + L * DP * DP + OUTP * DP),
        transcendentals=B_pad * 2 * A,
        bytes_accessed=int(slab.size * slab.dtype.itemsize
                           + B_pad * SP * 4 + B_pad * OUTP * 4),
    )

    kern = functools.partial(_policy1d_kernel, sp=SP, dp=DP, outp=OUTP,
                             action_size=A, layers=L)

    out = pl.pallas_call(
        kern,
        out_shape=jax.ShapeDtypeStruct((OUTP, B_pad), jnp.float32),
        grid=(B_pad // TB,),
        in_specs=[
            pl.BlockSpec(memory_space=pltpu.MemorySpace.SMEM),   # 1/logheat scalar
            pl.BlockSpec((SP, TB), lambda i: (0, i)),            # x tile (lane-dense)
            pl.BlockSpec(slab.shape, lambda i: (0, 0)),          # packed params (resident)
        ],
        out_specs=pl.BlockSpec((OUTP, TB), lambda i: (0, i)),    # lane-dense output
        compiler_params=pltpu.CompilerParams(
            dimension_semantics=("parallel",)),
        cost_estimate=cost,
    )(inv_heat, x_t, slab)
    return out, B


def policy1d_forward(x, packed, *, logheat=1.0):
    """get_action=False path: (p, v) = softmax(policy(x)/logheat), value(x)."""
    out, B = _policy1d_call(x, packed, logheat=logheat)
    A = packed[1]["action_size"]
    p = jnp.transpose(out[:A, :B])                 # (B, A) probs
    v = jnp.transpose(out[A:A + 1, :B])            # (B, 1) value
    return p, v


def policy1d_act(x, packed, key, *, logheat=1.0):
    """get_action=True path (random=0.0 => no epsilon-greedy branch)."""
    # TODO(synk): PyTorch samples host-side with np.random.multinomial plus an
    # epsilon-random branch; sampling could be folded in-kernel (pltpu.prng_seed +
    # pltpu.prng_random_bits Gumbel-max) to remove this extra dispatch.
    out, B = _policy1d_call(x, packed, logheat=logheat)
    A = packed[1]["action_size"]
    p = jnp.transpose(out[:A, :B])
    logits = jnp.transpose(out[A + 1:2 * A + 1, :B])   # temperature-scaled logits
    actions = jax.random.categorical(key, logits, axis=1)
    actions = actions.reshape(-1, 1).astype(jnp.uint8)
    return p, actions


# --------------------------- pure-JAX reference -------------------------------
def _reference_forward(x, params, logheat):
    pws, pbs, vws, vbs = params

    def mlp(h, ws, bs):
        for w, b in zip(ws[:-1], bs[:-1]):
            h = jnp.maximum(h @ w + b, 0.0)
        return h @ ws[-1] + bs[-1]

    p = jax.nn.softmax(mlp(x, pws, pbs) / logheat, axis=1)
    v = mlp(x, vws, vbs)
    return p, v


# ------------------------------- main ----------------------------------------
if __name__ == "__main__":
    STATE_SIZE = 4
    ACTION_SIZE = 2
    HIDDEN_SIZE = 32
    LAYERS = 2
    BATCH = 8
    LOGHEAT = 1.0

    root = jax.random.PRNGKey(0)
    k_params, k_x, k_sample = jax.random.split(root, 3)

    params = init_policy1d_params(
        k_params, state_size=STATE_SIZE, action_size=ACTION_SIZE,
        hidden_size=HIDDEN_SIZE, layers=LAYERS)

    # one-time host-side repack into a single lane-dense, bias-folded slab
    packed = pack_policy1d_params(
        params, state_size=STATE_SIZE, action_size=ACTION_SIZE,
        hidden_size=HIDDEN_SIZE, layers=LAYERS)

    x = jax.random.normal(k_x, (BATCH, STATE_SIZE), jnp.float32)

    # get_action=False path: (p, v) straight from the fused Pallas kernel
    p, v = policy1d_forward(x, packed, logheat=LOGHEAT)
    jax.block_until_ready((p, v))

    # get_action=True path: sample actions from the temperature-scaled logits
    p2, actions = policy1d_act(x, packed, k_sample, logheat=LOGHEAT)
    jax.block_until_ready((p2, actions))

    assert p.shape == (BATCH, ACTION_SIZE)
    assert v.shape == (BATCH, 1)
    assert actions.shape == (BATCH, 1) and actions.dtype == jnp.uint8
    # softmax rows must sum to 1 (approx reciprocal => loose tolerance)
    assert jnp.allclose(jnp.sum(p, axis=1), 1.0, atol=2e-3)

    # correctness vs. pure-JAX reference of the unfused module
    p_ref, v_ref = _reference_forward(x, params, LOGHEAT)
    assert jnp.allclose(p, p_ref, atol=5e-3, rtol=5e-3), \
        f"policy mismatch: max abs err {jnp.max(jnp.abs(p - p_ref))}"
    assert jnp.allclose(v, v_ref, atol=5e-3, rtol=5e-3), \
        f"value mismatch: max abs err {jnp.max(jnp.abs(v - v_ref))}"

    print("KERNEL_OK")
</pallas_src>

<mosaic_0001>
module attributes {stable_mosaic.version = 11 : i64} {
  func.func @_policy1d_kernel(%arg0: i32, %arg1: memref<1xf32, #tpu.memory_space<smem>>, %arg2: memref<8x128xf32, #tpu.memory_space<vmem>>, %arg3: memref<392x128xf32, #tpu.memory_space<vmem>>, %arg4: memref<8x128xf32, #tpu.memory_space<vmem>>) attributes {dimension_semantics = [#tpu.dimension_semantics<parallel>], iteration_bounds = array<i64: 1>, scalar_prefetch = 0 : i64, scratch_operands = 0 : i64, tpu.core_type = #tpu.core_type<tc>, window_params = [{transform_indices = @transform_0, window_bounds = array<i64: 1>}, {transform_indices = @transform_1, window_bounds = array<i64: 8, 128>}, {pipeline_mode = #tpu.pipeline_mode<synchronous>, transform_indices = @transform_2, window_bounds = array<i64: 392, 128>}, {transform_indices = @transform_3, window_bounds = array<i64: 8, 128>}]} {
    %c0 = arith.constant 0 : index
    %0 = memref.load %arg1[%c0] : memref<1xf32, #tpu.memory_space<smem>>
    %c0_0 = arith.constant 0 : index
    %c0_1 = arith.constant 0 : index
    %1 = vector.load %arg2[%c0_0, %c0_1] : memref<8x128xf32, #tpu.memory_space<vmem>>, vector<8x128xf32>
    %c0_2 = arith.constant 0 : index
    %c0_3 = arith.constant 0 : index
    %2 = vector.load %arg3[%c0_2, %c0_3] : memref<392x128xf32, #tpu.memory_space<vmem>>, vector<128x8xf32>
    %cst = arith.constant dense<0.000000e+00> : vector<128x128xf32>
    %3 = tpu.matmul %2, %1, %cst {dimension_numbers = #tpu.dot_dimension_numbers<[1], [0], [0], [1], [0, 0, 1, 1], [], []>} : vector<128x8xf32>, vector<8x128xf32>, vector<128x128xf32> -> vector<128x128xf32>
    %cst_4 = arith.constant 0.000000e+00 : f32
    %4 = vector.broadcast %cst_4 : f32 to vector<128x128xf32>
    %5 = arith.maximumf %3, %4 : vector<128x128xf32>
    %c128 = arith.constant 128 : index
    %c0_5 = arith.constant 0 : index
    %6 = vector.load %arg3[%c128, %c0_5] : memref<392x128xf32, #tpu.memory_space<vmem>>, vector<128x128xf32>
    %cst_6 = arith.constant dense<0.000000e+00> : vector<128x128xf32>
    %7 = tpu.matmul %6, %5, %cst_6 {dimension_numbers = #tpu.dot_dimension_numbers<[1], [0], [0], [1], [0, 0, 1, 1], [], []>} : vector<128x128xf32>, vector<128x128xf32>, vector<128x128xf32> -> vector<128x128xf32>
    %cst_7 = arith.constant 0.000000e+00 : f32
    %8 = vector.broadcast %cst_7 : f32 to vector<128x128xf32>
    %9 = arith.maximumf %7, %8 : vector<128x128xf32>
    %c256 = arith.constant 256 : index
    %c0_8 = arith.constant 0 : index
    %10 = vector.load %arg3[%c256, %c0_8] : memref<392x128xf32, #tpu.memory_space<vmem>>, vector<128x128xf32>
    %cst_9 = arith.constant dense<0.000000e+00> : vector<128x128xf32>
    %11 = tpu.matmul %10, %9, %cst_9 {dimension_numbers = #tpu.dot_dimension_numbers<[1], [0], [0], [1], [0, 0, 1, 1], [], []>} : vector<128x128xf32>, vector<128x128xf32>, vector<128x128xf32> -> vector<128x128xf32>
    %cst_10 = arith.constant 0.000000e+00 : f32
    %12 = vector.broadcast %cst_10 : f32 to vector<128x128xf32>
    %13 = arith.maximumf %11, %12 : vector<128x128xf32>
    %c384 = arith.constant 384 : index
    %c0_11 = arith.constant 0 : index
    %14 = vector.load %arg3[%c384, %c0_11] : memref<392x128xf32, #tpu.memory_space<vmem>>, vector<8x128xf32>
    %cst_12 = arith.constant dense<0.000000e+00> : vector<8x128xf32>
    %15 = tpu.matmul %14, %13, %cst_12 {dimension_numbers = #tpu.dot_dimension_numbers<[1], [0], [0], [1], [0, 0, 1, 1], [], []>} : vector<8x128xf32>, vector<128x128xf32>, vector<8x128xf32> -> vector<8x128xf32>
    %16 = tpu.iota {dimensions = array<i32: 0>} : vector<8x128xi32>
    %c2_i32 = arith.constant 2 : i32
    %17 = vector.broadcast %c2_i32 : i32 to vector<8x128xi32>
    %18 = arith.cmpi slt, %16, %17 : vector<8x128xi32>
    %19 = vector.broadcast %0 : f32 to vector<8x128xf32>
    %20 = arith.mulf %15, %19 : vector<8x128xf32>
    %cst_13 = arith.constant 0xFF800000 : f32
    %21 = vector.broadcast %cst_13 : f32 to vector<8x128xf32>
    %22 = arith.select %18, %20, %21 : vector<8x128xi1>, vector<8x128xf32>
    %cst_14 = arith.constant dense<0xFF800000> : vector<128xf32>
    %23 = vector.multi_reduction <maximumf>, %22, %cst_14 [0] : vector<8x128xf32> to vector<128xf32>
    %24 = vector.shape_cast %23 : vector<128xf32> to vector<1x128xf32>
    %25 = vector.broadcast %24 : vector<1x128xf32> to vector<8x128xf32>
    %26 = arith.subf %22, %25 : vector<8x128xf32>
    %27 = math.exp %26 : vector<8x128xf32>
    %cst_15 = arith.constant dense<0.000000e+00> : vector<128xf32>
    %28 = vector.multi_reduction <add>, %27, %cst_15 [0] : vector<8x128xf32> to vector<128xf32>
    %29 = vector.shape_cast %28 : vector<128xf32> to vector<1x128xf32>
    %30 = tpu.reciprocal %29 {approx = true} : vector<1x128xf32> -> vector<1x128xf32>
    %31 = vector.broadcast %30 : vector<1x128xf32> to vector<8x128xf32>
    %32 = arith.mulf %27, %31 : vector<8x128xf32>
    %c2_i32_16 = arith.constant 2 : i32
    %33 = vector.broadcast %c2_i32_16 : i32 to vector<8x128xi32>
    %34 = arith.cmpi sgt, %16, %33 : vector<8x128xi32>
    %c5_i32 = arith.constant 5 : i32
    %35 = vector.broadcast %c5_i32 : i32 to vector<8x128xi32>
    %36 = arith.cmpi slt, %16, %35 : vector<8x128xi32>
    %37 = arith.andi %34, %36 : vector<8x128xi1>
    %38 = arith.select %37, %20, %15 : vector<8x128xi1>, vector<8x128xf32>
    %39 = arith.select %18, %32, %38 : vector<8x128xi1>, vector<8x128xf32>
    %c0_17 = arith.constant 0 : index
    %c0_18 = arith.constant 0 : index
    %40 = vector.load %arg4[%c0_17, %c0_18] : memref<8x128xf32, #tpu.memory_space<vmem>>, vector<8x128xf32>
    tpu.vector_store %arg4[%c0_17, %c0_18], %39 {strides = array<i32>} : memref<8x128xf32, #tpu.memory_space<vmem>>, vector<8x128xf32>,
    return
  }
  func.func @transform_0(%arg0: i32) -> i32 {
    %c0_i32 = arith.constant 0 : i32
    %c0_i32_0 = arith.constant 0 : i32
    return %c0_i32 : i32
  }
  func.func @transform_1(%arg0: i32) -> (i32, i32) {
    %c0_i32 = arith.constant 0 : i32
    %c0_i32_0 = arith.constant 0 : i32
    return %c0_i32, %arg0 : i32, i32
  }
  func.func @transform_2(%arg0: i32) -> (i32, i32) {
    %c0_i32 = arith.constant 0 : i32
    %c0_i32_0 = arith.constant 0 : i32
    %c0_i32_1 = arith.constant 0 : i32
    return %c0_i32, %c0_i32_0 : i32, i32
  }
  func.func @transform_3(%arg0: i32) -> (i32, i32) {
    %c0_i32 = arith.constant 0 : i32
    %c0_i32_0 = arith.constant 0 : i32
    return %c0_i32, %arg0 : i32, i32
  }
}

</mosaic_0001>

<bundles_post_ra>
// kernel: tpu_custom_call.1
= control target key start
LH: loop header
LB: loop body
LE: loop exit
PB: predicated region body
PF: predicated region fallthrough
CT: control target
= control target key end

     0   :  { %9 = vsyncpa [#allocation4], 0  ;;  %s1291_s0 = inlined_call_operand.<no memory space> [shape: f32[1], index: 0, kind: input, shape index: {}]   ;;  %s1292_s1 = inlined_call_operand.hbm [shape: f32[8,128], index: 1, kind: input, shape index: {}]   ;;  %s1293_s2 = inlined_call_operand.hbm [shape: f32[392,128], index: 2, kind: input, shape index: {}]   ;;  %s1294_s3 = inlined_call_operand.hbm [shape: f32[8,128], index: 3, kind: output, shape index: {}]  }
   0x1   :  { %10 = vsyncpa [#allocation7], 0 }
   0x2   :  { %11 = vsyncpa [#allocation5], 0  ;;  %s1199_s12 = smov [#allocation3]   ;;  %s1200_s14 = smov [#allocation6]  }
   0x3   :  { %s20_s13 = sshll.u32 %s1199_s12, 4  ;;  %s29_s15 = sshll.u32 %s1200_s14, 4  ;;  %s21_s13 = int_to_ptr.vmem [resolvable:$true] %s20_s13  ;;  %s1227_s15 = int_to_ptr.vmem [resolvable:$true] %s29_s15 }
   0x4   :  { %s1127_s18 = scalar_lea.hbm %s1292_s1, 128 }
   0x5   :  { %p1128_p0 = scmp.ne.s32.totalorder %s1292_s1, %s1127_s18  ;;  %p1131_p1 = scmp.lt.u32.totalorder %s1127_s18, %s1292_s1 }
   0x7   :  { %p1133_p2 = pnand %p1131_p1, %p1128_p0 }
   0x9   :  { %1136 = shalt.err (!%p1133_p2)
}
   0xa   :  { %s1137_s23 = scalar_lea.vmem %s21_s13, 128  ;;  %p1142_p4 = scmp.lt.s32.totalorder %s21_s13, %s21_s13 }
   0xb   :  { %p1138_p3 = scmp.ne.s32.totalorder %s21_s13, %s1137_s23  ;;  %p1143_p5 = scmp.lt.s32.totalorder %s1137_s23, %s1137_s23 }
   0xd   :  { %p1144_p6 = por %p1143_p5, %p1142_p4 }
   0xf   :  { %p1145_p7 = pnand %p1144_p6, %p1138_p3 }
  0x11   :  { %1148 = shalt.err (!%p1145_p7)
}
  0x12   :  { %23 = dma.hbm_to_vmem [thread:$0]  %s1292_s1, 128, %s21_s13, [#allocation4]  }
  0x13   :  { %s1149_s28 = scalar_lea.hbm %s1293_s2, 6272 }
  0x14   :  { %p1150_p8 = scmp.ne.s32.totalorder %s1293_s2, %s1149_s28  ;;  %p1153_p9 = scmp.lt.u32.totalorder %s1149_s28, %s1293_s2 }
  0x16   :  { %p1155_p10 = pnand %p1153_p9, %p1150_p8 }
  0x18   :  { %1158 = shalt.err (!%p1155_p10)
}
  0x19   :  { %s1159_s6 = scalar_lea.vmem %s1227_s15, 6272  ;;  %p1164_p12 = scmp.lt.s32.totalorder %s1227_s15, %s1227_s15 }
  0x1a   :  { %p1160_p11 = scmp.ne.s32.totalorder %s1227_s15, %s1159_s6  ;;  %p1165_p13 = scmp.lt.s32.totalorder %s1159_s6, %s1159_s6 }
  0x1c   :  { %p1166_p0 = por %p1165_p13, %p1164_p12 }
  0x1e   :  { %p1167_p1 = pnand %p1166_p0, %p1160_p11 }
  0x20   :  { %1170 = shalt.err (!%p1167_p1)
}
  0x21   :  { %s1201_s1 = smov 128   ;;  %s1202_s7 = smov 8  }
  0x22   :  { %35 = dma.hbm_to_vmem [thread:$0]  %s1293_s2, 6272, %s1227_s15, [#allocation7], %s1201_s1, %s1201_s1, %s1202_s7  }
  0x23   :  { %1193 = dma.done.wait [#allocation4], 128  }
  0x24   :  { %1194 = vsyncadd [#allocation4], 4294967168 }
  0x25   :  { %1195 = dma.done.wait [#allocation7], 6272  }
  0x26   :  { %1196 = vsyncadd [#allocation7], 4294961024  ;;  %vm60_vm0 = vcmask 64512   ;;  %v43_v0 = vld [vmem:[#allocation3] sm:$0xff]  ;;  %v44_v1 = vld [vmem:[#allocation6] sm:$0xff]  ;;  %vm1204_vm1 = vmmov 0  }
  0x27   :  { %v45_v2 = vld [vmem:[#allocation6 + $0x8] sm:$0xff]  ;;  %854 = vmatprep.subr.mxu0 %v43_v0  ;;  %856 = vmatprep.mubr.msk.f32.mxu0 %vm60_vm0, %v44_v1  ;;  %v46_v3 = vld [vmem:[#allocation6 + $0x10] sm:$0xff]  ;;  %v47_v4 = vld [vmem:[#allocation6 + $0x18] sm:$0xff] }
  0x28   :  { %855 = vmatpush3.msra.mxu0 %v43_v0  ;;  %v48_v5 = vld [vmem:[#allocation6 + $0x20] sm:$0xff]  ;;  %v49_v6 = vld [vmem:[#allocation6 + $0x28] sm:$0xff]  ;;  %v50_v7 = vld [vmem:[#allocation6 + $0x30] sm:$0xff] }
  0x29   :  { %857 = vmatmul.mubr.msk.f32.vlgmr.msra.gmra.mrb[0].mxu0 %vm60_vm0, %v45_v2  ;;  %v51_v8 = vld [vmem:[#allocation6 + $0x38] sm:$0xff]  ;;  %v52_v9 = vld [vmem:[#allocation6 + $0x40] sm:$0xff]  ;;  %v53_v10 = vld [vmem:[#allocation6 + $0x48] sm:$0xff] }
  0x2a   :  { %859 = vmatprep.mubr.msk.f32.mxu0 %vm60_vm0, %v46_v3  ;;  %v54_v11 = vld [vmem:[#allocation6 + $0x50] sm:$0xff]  ;;  %v55_v12 = vld [vmem:[#allocation6 + $0x58] sm:$0xff]  ;;  %v56_v13 = vld [vmem:[#allocation6 + $0x60] sm:$0xff] }
  0x2b   :  { %v57_v14 = vld [vmem:[#allocation6 + $0x68] sm:$0xff]  ;;  %v58_v15 = vld [vmem:[#allocation6 + $0x70] sm:$0xff]  ;;  %v59_v16 = vld [vmem:[#allocation6 + $0x78] sm:$0xff] }
  0x2c   :  { %v270_v17 = vld [vmem:[#allocation6 + $0x80] sm:$0xff]  ;;  %v271_v58 = vld [vmem:[#allocation6 + $0x88] sm:$0xff]  ;;  %v272_v59 = vld [vmem:[#allocation6 + $0x90] sm:$0xff] }
  0x2d   :  { %860 = vmatmul.mubr.msk.f32.gmra.mrb[2].mxu0 %vm60_vm0, %v47_v4  ;;  %912 = vmatprep.mubr.f32.mxu1 %v270_v17  ;;  %v273_v60 = vld [vmem:[#allocation6 + $0x98] sm:$0xff]  ;;  %v274_v61 = vld [vmem:[#allocation6 + $0xa0] sm:$0xff]  ;;  %v275_v62 = vld [vmem:[#allocation6 + $0xa8] sm:$0xff] }
  0x2e   :  { %862 = vmatprep.mubr.msk.f32.mxu0 %vm60_vm0, %v48_v5  ;;  %v276_v63 = vld [vmem:[#allocation6 + $0xb0] sm:$0xff]  ;;  %v277_v0 = vld [vmem:[#allocation6 + $0xb8] sm:$0xff]  ;;  %v278_v1 = vld [vmem:[#allocation6 + $0xc0] sm:$0xff] }
  0x2f   :  { %v279_v2 = vld [vmem:[#allocation6 + $0xc8] sm:$0xff]  ;;  %v280_v3 = vld [vmem:[#allocation6 + $0xd0] sm:$0xff]  ;;  %v281_v4 = vld [vmem:[#allocation6 + $0xd8] sm:$0xff] }
  0x30   :  { %v282_v5 = vld [vmem:[#allocation6 + $0xe0] sm:$0xff] }
  0x31   :  { %863 = vmatmul.mubr.msk.f32.gmra.mrb[4].mxu0 %vm60_vm0, %v49_v6  ;;  %v283_v6 = vld [vmem:[#allocation6 + $0xe8] sm:$0xff] }
  0x32   :  { %865 = vmatprep.mubr.msk.f32.mxu0 %vm60_vm0, %v50_v7  ;;  %v284_v7 = vld [vmem:[#allocation6 + $0xf0] sm:$0xff] }
  0x35   :  { %866 = vmatmul.mubr.msk.f32.gmra.mrb[6].mxu0 %vm60_vm0, %v51_v8  ;;  %v285_v8 = vld [vmem:[#allocation6 + $0xf8] sm:$0xff] }
  0x36   :  { %868 = vmatprep.mubr.msk.f32.mxu0 %vm60_vm0, %v52_v9  ;;  %v447_v9 = vld [vmem:[#allocation6 + $0x100] sm:$0xff] }
  0x39   :  { %869 = vmatmul.mubr.msk.f32.gmra.mrb[8].mxu0 %vm60_vm0, %v53_v10 }
  0x3a   :  { %871 = vmatprep.mubr.msk.f32.mxu0 %vm60_vm0, %v54_v11 }
  0x3d   :  { %872 = vmatmul.mubr.msk.f32.gmra.mrb[10].mxu0 %vm60_vm0, %v55_v12 }
  0x3e   :  { %874 = vmatprep.mubr.msk.f32.mxu0 %vm60_vm0, %v56_v13 }
  0x41   :  { %875 = vmatmul.mubr.msk.f32.gmra.mrb[12].mxu0 %vm60_vm0, %v57_v14 }
  0x42   :  { %877 = vmatprep.mubr.msk.f32.mxu0 %vm60_vm0, %v58_v15 }
  0x45   :  { %878 = vmatmul.mubr.msk.f32.gmra.mrb[14].mxu0 %vm60_vm0, %v59_v16 }
  0x46   :  { %968 = vmatprep.mubr.f32.mxu0 %v447_v9 }
  0xfc   :  { %v858_v18 = vpop.f32.mrb[0].mxu0 }
  0xfd   :  { %v255_v19 = vmax.f32 %v858_v18, 0.0  ;;  %v175_v20 = vpop.f32.mrb[1].mxu0 }
  0xfe   :  { %v254_v21 = vmax.f32 %v175_v20, 0.0 }
 0x100   :  { %v861_v22 = vpop.f32.mrb[2].mxu0  ;;  %v1027_v23 = vpack.c.bf16 %v255_v19, %v254_v21 }
 0x101   :  { %v257_v24 = vmax.f32 %v861_v22, 0.0  ;;  %v185_v25 = vpop.f32.mrb[3].mxu0 }
 0x102   :  { %v256_v26 = vmax.f32 %v185_v25, 0.0  ;;  %1028 = vmatprep.subr.bf16.mxu1 %v1027_v23 }
 0x103   :  { %1030 = vmatpush3.bf16.msra.mxu1 %v1027_v23 }
 0x104   :  { %v1031_v27 = vpack.c.bf16 %v257_v24, %v256_v26  ;;  %v864_v28 = vpop.f32.mrb[4].mxu0 }
 0x105   :  { %v259_v29 = vmax.f32 %v864_v28, 0.0  ;;  %v195_v30 = vpop.f32.mrb[5].mxu0 }
 0x106   :  { %v258_v31 = vmax.f32 %v195_v30, 0.0  ;;  %1032 = vmatprep.subr.bf16.mxu1 %v1031_v27 }
 0x107   :  { %1034 = vmatpush3.bf16.msra.mxu1 %v1031_v27 }
 0x108   :  { %v1035_v32 = vpack.c.bf16 %v259_v29, %v258_v31  ;;  %v867_v33 = vpop.f32.mrb[6].mxu0 }
 0x109   :  { %v261_v34 = vmax.f32 %v867_v33, 0.0  ;;  %v205_v35 = vpop.f32.mrb[7].mxu0 }
 0x10a   :  { %v260_v36 = vmax.f32 %v205_v35, 0.0  ;;  %1036 = vmatprep.subr.bf16.mxu1 %v1035_v32 }
 0x10b   :  { %1038 = vmatpush3.bf16.msra.mxu1 %v1035_v32 }
 0x10c   :  { %v1039_v37 = vpack.c.bf16 %v261_v34, %v260_v36  ;;  %v870_v38 = vpop.f32.mrb[8].mxu0 }
 0x10d   :  { %v263_v39 = vmax.f32 %v870_v38, 0.0  ;;  %v215_v40 = vpop.f32.mrb[9].mxu0 }
 0x10e   :  { %v262_v41 = vmax.f32 %v215_v40, 0.0  ;;  %1040 = vmatprep.subr.bf16.mxu1 %v1039_v37 }
 0x10f   :  { %1042 = vmatpush3.bf16.msra.mxu1 %v1039_v37 }
 0x110   :  { %v1043_v42 = vpack.c.bf16 %v263_v39, %v262_v41  ;;  %v873_v43 = vpop.f32.mrb[10].mxu0 }
 0x111   :  { %v265_v44 = vmax.f32 %v873_v43, 0.0  ;;  %v225_v45 = vpop.f32.mrb[11].mxu0 }
 0x112   :  { %v264_v46 = vmax.f32 %v225_v45, 0.0  ;;  %1044 = vmatprep.subr.bf16.mxu1 %v1043_v42 }
 0x113   :  { %1046 = vmatpush3.bf16.msra.mxu1 %v1043_v42 }
 0x114   :  { %v1047_v47 = vpack.c.bf16 %v265_v44, %v264_v46  ;;  %v876_v48 = vpop.f32.mrb[12].mxu0 }
 0x115   :  { %v267_v49 = vmax.f32 %v876_v48, 0.0  ;;  %v235_v50 = vpop.f32.mrb[13].mxu0 }
 0x116   :  { %v266_v51 = vmax.f32 %v235_v50, 0.0  ;;  %1048 = vmatprep.subr.bf16.mxu1 %v1047_v47  ;;  %v448_v50 = vld [vmem:[#allocation6 + $0x108] sm:$0xff] }
 0x117   :  { %1050 = vmatpush3.bf16.msra.mxu1 %v1047_v47 }
 0x118   :  { %v1051_v52 = vpack.c.bf16 %v267_v49, %v266_v51  ;;  %v879_v53 = vpop.f32.mrb[14].mxu0  ;;  %v449_v51 = vld [vmem:[#allocation6 + $0x110] sm:$0xff] }
 0x119   :  { %v269_v54 = vmax.f32 %v879_v53, 0.0  ;;  %v245_v55 = vpop.f32.mrb[15].mxu0  ;;  %v451_v53 = vld [vmem:[#allocation6 + $0x120] sm:$0xff] }
 0x11a   :  { %v268_v56 = vmax.f32 %v245_v55, 0.0  ;;  %1052 = vmatprep.subr.bf16.mxu1 %v1051_v52  ;;  %v453_v55 = vld [vmem:[#allocation6 + $0x130] sm:$0xff] }
 0x11b   :  { %1054 = vmatpush3.bf16.msra.mxu1 %v1051_v52  ;;  %v450_v52 = vld [vmem:[#allocation6 + $0x118] sm:$0xff] }
 0x11c   :  { %v1055_v57 = vpack.c.bf16 %v269_v54, %v268_v56  ;;  %v452_v54 = vld [vmem:[#allocation6 + $0x128] sm:$0xff]  ;;  %v454_v56 = vld [vmem:[#allocation6 + $0x138] sm:$0xff] }
 0x11e   :  { %1056 = vmatprep.subr.bf16.mxu1 %v1055_v57 }
 0x11f   :  { %1058 = vmatpush3.bf16.msra.mxu1 %v1055_v57  ;;  %v455_v57 = vld [vmem:[#allocation6 + $0x140] sm:$0xff] }
 0x122   :  { %913 = vmatmul.mubr.f32.vlgmr.msra.gmra.mrb[0].mxu1 %v271_v58  ;;  %v456_v58 = vld [vmem:[#allocation6 + $0x148] sm:$0xff] }
 0x123   :  { %915 = vmatprep.mubr.f32.mxu1 %v272_v59  ;;  %v457_v59 = vld [vmem:[#allocation6 + $0x150] sm:$0xff] }
 0x126   :  { %916 = vmatmul.mubr.f32.gmra.mrb[2].mxu1 %v273_v60  ;;  %v458_v60 = vld [vmem:[#allocation6 + $0x158] sm:$0xff] }
 0x127   :  { %918 = vmatprep.mubr.f32.mxu1 %v274_v61  ;;  %v459_v61 = vld [vmem:[#allocation6 + $0x160] sm:$0xff] }
 0x12a   :  { %919 = vmatmul.mubr.f32.gmra.mrb[4].mxu1 %v275_v62  ;;  %v460_v62 = vld [vmem:[#allocation6 + $0x168] sm:$0xff] }
 0x12b   :  { %921 = vmatprep.mubr.f32.mxu1 %v276_v63  ;;  %v461_v63 = vld [vmem:[#allocation6 + $0x170] sm:$0xff] }
 0x12e   :  { %922 = vmatmul.mubr.f32.gmra.mrb[6].mxu1 %v277_v0  ;;  %v462_v0 = vld [vmem:[#allocation6 + $0x178] sm:$0xff] }
 0x12f   :  { %924 = vmatprep.mubr.f32.mxu1 %v278_v1  ;;  %v1203_v1 = vmov 0.0|0.0  }
 0x130   :  { %1091 = vmatprep.subr.bf16.mxu1 %v1203_v1 }
 0x132   :  { %925 = vmatmul.mubr.f32.gmra.mrb[8].mxu1 %v279_v2  ;;  %v1205_v2 = vmov 0.0  }
 0x133   :  { %927 = vmatprep.mubr.f32.mxu1 %v280_v3 }
 0x136   :  { %928 = vmatmul.mubr.f32.gmra.mrb[10].mxu1 %v281_v4 }
 0x137   :  { %930 = vmatprep.mubr.f32.mxu1 %v282_v5 }
 0x13a   :  { %931 = vmatmul.mubr.f32.gmra.mrb[12].mxu1 %v283_v6 }
 0x13b   :  { %933 = vmatprep.mubr.f32.mxu1 %v284_v7 }
 0x13e   :  { %934 = vmatmul.mubr.f32.gmra.mrb[14].mxu1 %v285_v8 }
 0x13f   :  { %1024 = vmatprep.mubr.msk.f32.mxu1 %vm1204_vm1, %v1205_v2 }
 0x1f5   :  { %v914_v10 = vpop.f32.mrb[0].mxu1 }
 0x1f6   :  { %v432_v11 = vmax.f32 %v914_v10, 0.0  ;;  %v352_v12 = vpop.f32.mrb[1].mxu1 }
 0x1f7   :  { %v431_v13 = vmax.f32 %v352_v12, 0.0 }
 0x1f9   :  { %v1059_v14 = vpack.c.bf16 %v432_v11, %v431_v13  ;;  %v917_v15 = vpop.f32.mrb[2].mxu1 }
 0x1fa   :  { %v434_v16 = vmax.f32 %v917_v15, 0.0  ;;  %v362_v17 = vpop.f32.mrb[3].mxu1 }
 0x1fb   :  { %v433_v18 = vmax.f32 %v362_v17, 0.0  ;;  %1060 = vmatprep.subr.bf16.mxu0 %v1059_v14 }
 0x1fc   :  { %1062 = vmatpush3.bf16.msra.mxu0 %v1059_v14 }
 0x1fd   :  { %v1063_v19 = vpack.c.bf16 %v434_v16, %v433_v18  ;;  %v920_v20 = vpop.f32.mrb[4].mxu1 }
 0x1fe   :  { %v436_v21 = vmax.f32 %v920_v20, 0.0  ;;  %v372_v22 = vpop.f32.mrb[5].mxu1 }
 0x1ff   :  { %v435_v23 = vmax.f32 %v372_v22, 0.0  ;;  %1064 = vmatprep.subr.bf16.mxu0 %v1063_v19 }
 0x200   :  { %1066 = vmatpush3.bf16.msra.mxu0 %v1063_v19 }
 0x201   :  { %v1067_v24 = vpack.c.bf16 %v436_v21, %v435_v23  ;;  %v923_v25 = vpop.f32.mrb[6].mxu1 }
 0x202   :  { %v438_v26 = vmax.f32 %v923_v25, 0.0  ;;  %v382_v27 = vpop.f32.mrb[7].mxu1 }
 0x203   :  { %v437_v28 = vmax.f32 %v382_v27, 0.0  ;;  %1068 = vmatprep.subr.bf16.mxu0 %v1067_v24 }
 0x204   :  { %1070 = vmatpush3.bf16.msra.mxu0 %v1067_v24 }
 0x205   :  { %v1071_v29 = vpack.c.bf16 %v438_v26, %v437_v28  ;;  %v926_v30 = vpop.f32.mrb[8].mxu1 }
 0x206   :  { %v440_v31 = vmax.f32 %v926_v30, 0.0  ;;  %v392_v32 = vpop.f32.mrb[9].mxu1 }
 0x207   :  { %v439_v33 = vmax.f32 %v392_v32, 0.0  ;;  %1072 = vmatprep.subr.bf16.mxu0 %v1071_v29 }
 0x208   :  { %1074 = vmatpush3.bf16.msra.mxu0 %v1071_v29 }
 0x209   :  { %v1075_v34 = vpack.c.bf16 %v440_v31, %v439_v33  ;;  %v929_v35 = vpop.f32.mrb[10].mxu1 }
 0x20a   :  { %v442_v36 = vmax.f32 %v929_v35, 0.0  ;;  %v402_v37 = vpop.f32.mrb[11].mxu1 }
 0x20b   :  { %v441_v38 = vmax.f32 %v402_v37, 0.0  ;;  %1076 = vmatprep.subr.bf16.mxu0 %v1075_v34 }
 0x20c   :  { %1078 = vmatpush3.bf16.msra.mxu0 %v1075_v34 }
 0x20d   :  { %v1079_v39 = vpack.c.bf16 %v442_v36, %v441_v38  ;;  %v932_v40 = vpop.f32.mrb[12].mxu1 }
 0x20e   :  { %v444_v41 = vmax.f32 %v932_v40, 0.0  ;;  %v412_v42 = vpop.f32.mrb[13].mxu1 }
 0x20f   :  { %v443_v43 = vmax.f32 %v412_v42, 0.0  ;;  %1080 = vmatprep.subr.bf16.mxu0 %v1079_v39 }
 0x210   :  { %1082 = vmatpush3.bf16.msra.mxu0 %v1079_v39 }
 0x211   :  { %v1083_v44 = vpack.c.bf16 %v444_v41, %v443_v43  ;;  %v935_v45 = vpop.f32.mrb[14].mxu1  ;;  %v624_v43 = vld [vmem:[#allocation6 + $0x180] sm:$0xff] }
 0x212   :  { %v446_v46 = vmax.f32 %v935_v45, 0.0  ;;  %v422_v47 = vpop.f32.mrb[15].mxu1 }
 0x213   :  { %v445_v48 = vmax.f32 %v422_v47, 0.0  ;;  %1084 = vmatprep.subr.bf16.mxu0 %v1083_v44 }
 0x214   :  { %1086 = vmatpush3.bf16.msra.mxu0 %v1083_v44  ;;  %v695_v44 = vlaneseq }
 0x215   :  { %v1087_v49 = vpack.c.bf16 %v446_v46, %v445_v48  ;;  %v698_v46 = vstv %s1291_s0  ;;  %s1206_s0 = smov [#allocation8]  }
 0x216   :  { %v696_v45 = vshrl.u32 %v695_v44, 7  ;;  %s730_s11 = sshll.u32 %s1206_s0, 4  ;;  %s731_s11 = int_to_ptr.vmem [resolvable:$true] %s730_s11 }
 0x217   :  { %1088 = vmatprep.subr.bf16.mxu0 %v1087_v49  ;;  %s1171_s12 = scalar_lea.vmem %s731_s11, 128  ;;  %p1176_p3 = scmp.lt.s32.totalorder %s731_s11, %s731_s11 }
 0x218   :  { %1090 = vmatpush3.bf16.msra.mxu0 %v1087_v49  ;;  %vm697_vm2 = vcmp.lt.s32.totalorder %v696_v45, 2  ;;  %vm718_vm3 = vcmp.gt.s32.totalorder %v696_v45, 2  ;;  %vm719_vm4 = vcmp.lt.s32.totalorder %v696_v45, 5  ;;  %p1172_p2 = scmp.ne.s32.totalorder %s731_s11, %s1171_s12  ;;  %p1177_p4 = scmp.lt.s32.totalorder %s1171_s12, %s1171_s12 }
 0x219   :  { %vm720_vm5 = vmand %vm718_vm3, %vm719_vm4 }
 0x21a   :  { %p1178_p5 = por %p1177_p4, %p1176_p3 }
 0x21b   :  { %969 = vmatmul.mubr.f32.vlgmr.msra.gmra.mrb[16].mxu0 %v448_v50 }
 0x21c   :  { %971 = vmatprep.mubr.f32.mxu0 %v449_v51  ;;  %p1179_p6 = pnand %p1178_p5, %p1172_p2 }
 0x21f   :  { %972 = vmatmul.mubr.f32.gmra.mrb[18].mxu0 %v450_v52 }
 0x220   :  { %974 = vmatprep.mubr.f32.mxu0 %v451_v53 }
 0x223   :  { %975 = vmatmul.mubr.f32.gmra.mrb[20].mxu0 %v452_v54 }
 0x224   :  { %977 = vmatprep.mubr.f32.mxu0 %v453_v55 }
 0x227   :  { %978 = vmatmul.mubr.f32.gmra.mrb[22].mxu0 %v454_v56 }
 0x228   :  { %980 = vmatprep.mubr.f32.mxu0 %v455_v57 }
 0x22b   :  { %981 = vmatmul.mubr.f32.gmra.mrb[24].mxu0 %v456_v58 }
 0x22c   :  { %983 = vmatprep.mubr.f32.mxu0 %v457_v59 }
 0x22f   :  { %984 = vmatmul.mubr.f32.gmra.mrb[26].mxu0 %v458_v60 }
 0x230   :  { %986 = vmatprep.mubr.f32.mxu0 %v459_v61 }
 0x233   :  { %987 = vmatmul.mubr.f32.gmra.mrb[28].mxu0 %v460_v62 }
 0x234   :  { %989 = vmatprep.mubr.f32.mxu0 %v461_v63 }
 0x237   :  { %990 = vmatmul.mubr.f32.gmra.mrb[30].mxu0 %v462_v0 }
 0x2ee   :  { %v970_v3 = vpop.f32.mrb[16].mxu0 }
 0x2ef   :  { %v609_v4 = vmax.f32 %v970_v3, 0.0  ;;  %v529_v5 = vpop.f32.mrb[17].mxu0 }
 0x2f0   :  { %v608_v6 = vmax.f32 %v529_v5, 0.0 }
 0x2f2   :  { %v1092_v7 = vpack.c.bf16 %v609_v4, %v608_v6  ;;  %v973_v8 = vpop.f32.mrb[18].mxu0 }
 0x2f3   :  { %v611_v9 = vmax.f32 %v973_v8, 0.0  ;;  %v539_v10 = vpop.f32.mrb[19].mxu0 }
 0x2f4   :  { %v610_v11 = vmax.f32 %v539_v10, 0.0  ;;  %1093 = vmatpush3.bf16.msra.mxu1 %v1092_v7 }
 0x2f5   :  { %1094 = vmatprep.subr.bf16.mxu1 %v1203_v1 }
 0x2f6   :  { %v1095_v12 = vpack.c.bf16 %v611_v9, %v610_v11  ;;  %v976_v13 = vpop.f32.mrb[20].mxu0 }
 0x2f7   :  { %v613_v14 = vmax.f32 %v976_v13, 0.0  ;;  %v549_v15 = vpop.f32.mrb[21].mxu0 }
 0x2f8   :  { %v612_v16 = vmax.f32 %v549_v15, 0.0  ;;  %1096 = vmatpush3.bf16.msra.mxu1 %v1095_v12 }
 0x2f9   :  { %1097 = vmatprep.subr.bf16.mxu1 %v1203_v1 }
 0x2fa   :  { %v1098_v17 = vpack.c.bf16 %v613_v14, %v612_v16  ;;  %v979_v18 = vpop.f32.mrb[22].mxu0 }
 0x2fb   :  { %v615_v19 = vmax.f32 %v979_v18, 0.0  ;;  %v559_v20 = vpop.f32.mrb[23].mxu0 }
 0x2fc   :  { %v614_v21 = vmax.f32 %v559_v20, 0.0  ;;  %1099 = vmatpush3.bf16.msra.mxu1 %v1098_v17 }
 0x2fd   :  { %1100 = vmatprep.subr.bf16.mxu1 %v1203_v1 }
 0x2fe   :  { %v1101_v22 = vpack.c.bf16 %v615_v19, %v614_v21  ;;  %v982_v23 = vpop.f32.mrb[24].mxu0 }
 0x2ff   :  { %v617_v24 = vmax.f32 %v982_v23, 0.0  ;;  %v569_v25 = vpop.f32.mrb[25].mxu0 }
 0x300   :  { %v616_v26 = vmax.f32 %v569_v25, 0.0  ;;  %1102 = vmatpush3.bf16.msra.mxu1 %v1101_v22 }
 0x301   :  { %1103 = vmatprep.subr.bf16.mxu1 %v1203_v1 }
 0x302   :  { %v1104_v27 = vpack.c.bf16 %v617_v24, %v616_v26  ;;  %v985_v28 = vpop.f32.mrb[26].mxu0 }
 0x303   :  { %v619_v29 = vmax.f32 %v985_v28, 0.0  ;;  %v579_v30 = vpop.f32.mrb[27].mxu0 }
 0x304   :  { %v618_v31 = vmax.f32 %v579_v30, 0.0  ;;  %1105 = vmatpush3.bf16.msra.mxu1 %v1104_v27 }
 0x305   :  { %1106 = vmatprep.subr.bf16.mxu1 %v1203_v1 }
 0x306   :  { %v1107_v32 = vpack.c.bf16 %v619_v29, %v618_v31  ;;  %v988_v33 = vpop.f32.mrb[28].mxu0 }
 0x307   :  { %v621_v34 = vmax.f32 %v988_v33, 0.0  ;;  %v589_v35 = vpop.f32.mrb[29].mxu0 }
 0x308   :  { %v620_v36 = vmax.f32 %v589_v35, 0.0  ;;  %1108 = vmatpush3.bf16.msra.mxu1 %v1107_v32 }
 0x309   :  { %1109 = vmatprep.subr.bf16.mxu1 %v1203_v1 }
 0x30a   :  { %v1110_v37 = vpack.c.bf16 %v621_v34, %v620_v36  ;;  %v991_v38 = vpop.f32.mrb[30].mxu0 }
 0x30b   :  { %v623_v39 = vmax.f32 %v991_v38, 0.0  ;;  %v599_v40 = vpop.f32.mrb[31].mxu0 }
 0x30c   :  { %v622_v41 = vmax.f32 %v599_v40, 0.0  ;;  %1111 = vmatpush3.bf16.msra.mxu1 %v1110_v37 }
 0x30d   :  { %1112 = vmatprep.subr.bf16.mxu1 %v1203_v1 }
 0x30e   :  { %v1113_v42 = vpack.c.bf16 %v623_v39, %v622_v41 }
 0x310   :  { %1114 = vmatpush3.bf16.msra.mxu1 %v1113_v42 }
 0x313   :  { %1025 = vmatmul.mubr.f32.vlgmr.msra.gmra.mrb[16].mxu1 %v624_v43 }
 0x3e6   :  { %v691_v47 = vpop.f32.mrb[16].mxu1 }
 0x3e7   :  { %v699_v48 = vmul.f32 %v698_v46, %v691_v47  ;;  %v1026_v49 = vpop.f32.mrb[17].mxu1 }
 0x3e9   :  { %v700_v50 = vsel %vm697_vm2, %v699_v48, -inf  ;;  %v721_v4 = vsel %vm720_vm5, %v699_v48, %v691_v47 }
 0x3ea   :  { %v701_v51 = vrot.slane %v700_v50, 4 }
 0x3ec   :  { %v702_v52 = vmax.f32 %v700_v50, %v701_v51 }
 0x3ee   :  { %v703_v53 = vrot.slane %v702_v52, 2 }
 0x3f0   :  { %v704_v54 = vmax.f32 %v702_v52, %v703_v53 }
 0x3f2   :  { %v705_v55 = vrot.slane %v704_v54, 1 }
 0x3f4   :  { %v706_v56 = vmax.f32 %v704_v54, %v705_v55 }
 0x3f6   :  { %v707_v57 = vsub.f32 %v700_v50, %v706_v56 }
 0x3f8   :  { %v708_v58 = vmul.f32 1.442695, %v707_v57 }
 0x3fa   :  { %1123 = vpow2.f32 %v708_v58 }
 0x404   :  { %v1124_v59 = vpop.eup %1123 }
 0x405   :  { %v710_v60 = vrot.slane %v1124_v59, 4 }
 0x407   :  { %v711_v61 = vadd.f32 %v1124_v59, %v710_v60 }
 0x409   :  { %v712_v62 = vrot.slane %v711_v61, 2 }
 0x40b   :  { %v713_v63 = vadd.f32 %v712_v62, %v711_v61 }
 0x40d   :  { %v714_v0 = vrot.slane %v713_v63, 1 }
 0x40f   :  { %v715_v1 = vadd.f32 %v714_v0, %v713_v63 }
 0x411   :  { %1125 = vrcp.f32 %v715_v1 }
 0x41b   :  { %v1126_v2 = vpop.eup %1125 }
 0x41c   :  { %v717_v3 = vmul.f32 %v1126_v2, %v1124_v59 }
 0x41e   :  { %v722_v5 = vsel %vm697_vm2, %v717_v3, %v721_v4 }
 0x41f   :  { %723 = vst [vmem:[#allocation8] sm:$0xff] %v722_v5 }
 0x420   :  { %1182 = shalt.err (!%p1179_p6)
}
 0x421   :  { %s1183_s15 = scalar_lea.hbm %s1294_s3, 128 }
 0x422   :  { %p1184_p7 = scmp.ne.s32.totalorder %s1294_s3, %s1183_s15  ;;  %p1187_p8 = scmp.lt.u32.totalorder %s1183_s15, %s1294_s3 }
 0x424   :  { %p1189_p9 = pnand %p1187_p8, %p1184_p7 }
 0x426   :  { %1192 = shalt.err (!%p1189_p9)
}
 0x427   :  { %733 = dma.vmem_to_hbm [thread:$0]  %s731_s11, 128, %s1294_s3, [#allocation5]  }
 0x428   :  { %1197 = dma.done.wait [#allocation5], 128  }
 0x429   :  { %1198 = vsyncadd [#allocation5], 4294967168 }
 0x42a   :  { %737 = vsyncpa [#allocation4], 1 }
 0x42b   :  { %738 = vsyncpa [#allocation7], 1 }
 0x42c   :  { %739 = vsyncpa [#allocation5], 1 }

</bundles_post_ra>
